<compile_context>
chip_gen: v7x
topology: tpu7x:2x2x1
jax: 0.10.0
libtpu: 0.0.40
codegen_flags: <defaults>
</compile_context>

<pallas_src>
import functools

import jax
import jax.numpy as jnp
from jax import lax
from jax.experimental import pallas as pl
from jax.experimental.pallas import tpu as pltpu

LANE = 128
SUBLANE = 8


def _int_pow(w, gamma):
    """(1 - pt) ** gamma, unrolled to multiplies for small integer gamma."""
    g = float(gamma)
    if g == int(g) and 0 <= int(g) <= 8:
        gi = int(g)
        if gi == 0:
            return jnp.ones_like(w)
        out = w
        for _ in range(gi - 1):
            out = out * w
        return out
    return w ** jnp.float32(g)


def _focal_elementwise(x, t, *, alpha, gamma, logits):
    """Elementwise focal loss in f32, matching PyTorch semantics."""
    x = x.astype(jnp.float32)
    t = t.astype(jnp.float32)
    if logits:
        # binary_cross_entropy_with_logits (numerically stable form)
        bce = jnp.maximum(x, 0.0) - x * t + jnp.log1p(jnp.exp(-jnp.abs(x)))
    else:
        # binary_cross_entropy: PyTorch clamps the log terms at -100
        log_p = jnp.maximum(jnp.log(x), -100.0)
        log_1mp = jnp.maximum(jnp.log1p(-x), -100.0)
        bce = -(t * log_p + (1.0 - t) * log_1mp)
    pt = jnp.exp(-bce)
    return jnp.float32(alpha) * _int_pow(1.0 - pt, gamma) * bce


def _focal_sum_kernel(x_ref, t_ref, out_ref, acc_ref, *,
                      alpha, gamma, logits, n, block_rows, need_mask):
    c = pl.program_id(0)          # core-split axis ("parallel")
    i = pl.program_id(1)          # reduction axis ("arbitrary")
    steps = pl.num_programs(1)

    @pl.when(i == 0)
    def _():
        acc_ref[...] = jnp.zeros_like(acc_ref)

    fl = _focal_elementwise(x_ref[...], t_ref[...],
                            alpha=alpha, gamma=gamma, logits=logits)

    if need_mask:
        # Zero contributions from padded tail elements (static n).
        row = lax.broadcasted_iota(jnp.int32, fl.shape, 0)
        lane = lax.broadcasted_iota(jnp.int32, fl.shape, 1)
        block_idx = c * steps + i
        gidx = (block_idx * block_rows + row) * LANE + lane
        fl = jnp.where(gidx < n, fl, 0.0)

    acc_ref[...] += fl            # pure VPU accumulate, no per-step XLU reduce

    @pl.when(i == steps - 1)
    def _():
        # One sublane-group reduction at the end -> (8, 128) lane-dense slab.
        part = acc_ref[...].reshape(block_rows // SUBLANE, SUBLANE, LANE)
        out_ref[...] = jnp.sum(part, axis=0)


def _focal_ew_kernel(x_ref, t_ref, o_ref, *, alpha, gamma, logits):
    o_ref[...] = _focal_elementwise(
        x_ref[...], t_ref[...], alpha=alpha, gamma=gamma,
        logits=logits).astype(o_ref.dtype)


def focal_loss(inputs, targets, *, alpha=1.0, gamma=2.0,
               logits=False, reduce=True, block_rows=1024):
    """Pallas implementation of FocalLoss.forward(inputs, targets)."""
    orig_shape = inputs.shape
    n = int(inputs.size)

    x = inputs.reshape(-1)        # keep original dtype; kernel casts to f32
    t = targets.reshape(-1)

    rows = pl.cdiv(n, LANE)
    block_rows = min(int(block_rows), pl.cdiv(rows, SUBLANE) * SUBLANE)
    block_rows = pl.cdiv(block_rows, SUBLANE) * SUBLANE   # multiple of 8
    blocks = pl.cdiv(rows, block_rows)

    if reduce:
        # 2-way split across the leading "parallel" axis (v7x: one half per
        # TensorCore).  Only round blocks up to even when padding happens
        # anyway, to avoid introducing an otherwise-unneeded pad copy.
        pad_anyway = blocks * block_rows * LANE != n
        if blocks >= 2 and (pad_anyway or blocks % 2 == 0):
            n_splits = 2
            blocks = pl.cdiv(blocks, 2) * 2
        else:
            n_splits = 1
    else:
        n_splits = 1

    padded_rows = blocks * block_rows
    pad = padded_rows * LANE - n
    if pad:
        x = jnp.pad(x, (0, pad))
        t = jnp.pad(t, (0, pad))

    x2 = x.reshape(padded_rows, LANE)
    t2 = t.reshape(padded_rows, LANE)

    if reduce:
        steps = blocks // n_splits
        kernel = functools.partial(
            _focal_sum_kernel, alpha=alpha, gamma=gamma, logits=logits,
            n=n, block_rows=block_rows, need_mask=(pad > 0))
        in_spec = pl.BlockSpec((block_rows, LANE),
                               lambda c, i: (c * steps + i, 0))
        partials = pl.pallas_call(
            kernel,
            out_shape=jax.ShapeDtypeStruct((n_splits * SUBLANE, LANE),
                                           jnp.float32),
            grid_spec=pltpu.PrefetchScalarGridSpec(
                num_scalar_prefetch=0,
                grid=(n_splits, steps),
                in_specs=[in_spec, in_spec],
                out_specs=pl.BlockSpec((SUBLANE, LANE), lambda c, i: (c, 0)),
                scratch_shapes=[pltpu.VMEM((block_rows, LANE), jnp.float32)],
            ),
            compiler_params=pltpu.CompilerParams(
                dimension_semantics=("parallel", "arbitrary")),
        )(x2, t2)
        return (jnp.sum(partials) / jnp.float32(n)).astype(jnp.float32)
    else:
        kernel = functools.partial(_focal_ew_kernel,
                                   alpha=alpha, gamma=gamma, logits=logits)
        spec = pl.BlockSpec((block_rows, LANE), lambda i: (i, 0))
        out2 = pl.pallas_call(
            kernel,
            out_shape=jax.ShapeDtypeStruct((padded_rows, LANE), inputs.dtype),
            grid_spec=pltpu.PrefetchScalarGridSpec(
                num_scalar_prefetch=0,
                grid=(blocks,),
                in_specs=[spec, spec],
                out_specs=spec,
            ),
            compiler_params=pltpu.CompilerParams(
                dimension_semantics=("parallel",)),
        )(x2, t2)
        if pad:
            return out2.reshape(-1)[:n].reshape(orig_shape)
        return out2.reshape(orig_shape)


def _reference(inputs, targets, *, alpha=1.0, gamma=2.0,
               logits=False, reduce=True):
    fl = _focal_elementwise(inputs, targets,
                            alpha=alpha, gamma=gamma, logits=logits)
    return jnp.mean(fl) if reduce else fl


if __name__ == "__main__":
    key = jax.random.PRNGKey(0)
    k1, k2, k3, k4 = jax.random.split(key, 4)

    # Probabilities (logits=False default) for a multi-label CNN output:
    # batch=2, channels=4, spatial=16x16.
    inputs = jax.random.uniform(k1, (2, 4, 16, 16), dtype=jnp.float32,
                                minval=0.01, maxval=0.99)
    targets = jax.random.bernoulli(k2, 0.3, (2, 4, 16, 16)).astype(jnp.float32)

    # 1) Default FocalLoss(alpha=1, gamma=2, logits=False, reduce=True)
    out = focal_loss(inputs, targets, alpha=1.0, gamma=2.0,
                     logits=False, reduce=True)
    out = jax.block_until_ready(out)
    ref = _reference(inputs, targets, alpha=1.0, gamma=2.0,
                     logits=False, reduce=True)
    assert jnp.allclose(out, ref, rtol=1e-5, atol=1e-6), (out, ref)

    # 2) Non-reduced elementwise path.
    out_ew = focal_loss(inputs, targets, reduce=False)
    out_ew = jax.block_until_ready(out_ew)
    ref_ew = _reference(inputs, targets, reduce=False)
    assert out_ew.shape == inputs.shape
    assert jnp.allclose(out_ew, ref_ew, rtol=1e-5, atol=1e-6)

    # 3) logits=True path with small tiles -> exercises the 2-way grid split.
    logits_in = jax.random.normal(k3, (2, 4, 16, 16), dtype=jnp.float32)
    out_lg = focal_loss(logits_in, targets, logits=True, reduce=True,
                        block_rows=8)
    out_lg = jax.block_until_ready(out_lg)
    ref_lg = _reference(logits_in, targets, logits=True, reduce=True)
    assert jnp.allclose(out_lg, ref_lg, rtol=1e-5, atol=1e-6), (out_lg, ref_lg)

    # 4) Ragged size (not a multiple of 8*128) -> exercises the in-kernel mask.
    rag_in = jax.random.uniform(k4, (2, 3, 7, 11), dtype=jnp.float32,
                                minval=0.01, maxval=0.99)
    rag_tg = jax.random.bernoulli(k2, 0.3, (2, 3, 7, 11)).astype(jnp.float32)
    out_rg = focal_loss(rag_in, rag_tg, reduce=True)
    out_rg = jax.block_until_ready(out_rg)
    ref_rg = _reference(rag_in, rag_tg, reduce=True)
    assert jnp.allclose(out_rg, ref_rg, rtol=1e-5, atol=1e-6), (out_rg, ref_rg)

    print("KERNEL_OK")
</pallas_src>

<mosaic_0001>
module attributes {stable_mosaic.version = 11 : i64} {
  func.func @_focal_sum_kernel(%arg0: i32, %arg1: i32, %arg2: memref<16x128xf32, #tpu.memory_space<vmem>>, %arg3: memref<16x128xf32, #tpu.memory_space<vmem>>, %arg4: memref<8x128xf32, #tpu.memory_space<vmem>>, %arg5: memref<16x128xf32, #tpu.memory_space<vmem>>) attributes {dimension_semantics = [#tpu.dimension_semantics<parallel>, #tpu.dimension_semantics<arbitrary>], iteration_bounds = array<i64: 1, 1>, scalar_prefetch = 0 : i64, scratch_operands = 1 : i64, tpu.core_type = #tpu.core_type<tc>, window_params = [{transform_indices = @transform_0, window_bounds = array<i64: 16, 128>}, {transform_indices = @transform_1, window_bounds = array<i64: 16, 128>}, {transform_indices = @transform_2, window_bounds = array<i64: 8, 128>}]} {
    %c0_i32 = arith.constant 0 : i32
    %0 = arith.cmpi eq, %arg1, %c0_i32 : i32
    %1 = arith.extui %0 : i1 to i32
    %c0_i32_0 = arith.constant 0 : i32
    %2 = arith.cmpi ne, %1, %c0_i32_0 : i32
    scf.if %2 {
      %cst_17 = arith.constant 0.000000e+00 : f32
      %35 = vector.broadcast %cst_17 : f32 to vector<16x128xf32>
      %c0_18 = arith.constant 0 : index
      %c0_19 = arith.constant 0 : index
      %36 = vector.load %arg5[%c0_18, %c0_19] : memref<16x128xf32, #tpu.memory_space<vmem>>, vector<16x128xf32>
      tpu.vector_store %arg5[%c0_18, %c0_19], %35 {strides = array<i32>} : memref<16x128xf32, #tpu.memory_space<vmem>>, vector<16x128xf32>,
    } else {
    }
    %c0 = arith.constant 0 : index
    %c0_1 = arith.constant 0 : index
    %3 = vector.load %arg2[%c0, %c0_1] : memref<16x128xf32, #tpu.memory_space<vmem>>, vector<16x128xf32>
    %c0_2 = arith.constant 0 : index
    %c0_3 = arith.constant 0 : index
    %4 = vector.load %arg3[%c0_2, %c0_3] : memref<16x128xf32, #tpu.memory_space<vmem>>, vector<16x128xf32>
    %5 = math.log %3 : vector<16x128xf32>
    %cst = arith.constant -1.000000e+02 : f32
    %6 = vector.broadcast %cst : f32 to vector<16x128xf32>
    %7 = arith.maximumf %5, %6 : vector<16x128xf32>
    %cst_4 = arith.constant 0.000000e+00 : f32
    %8 = vector.broadcast %cst_4 : f32 to vector<16x128xf32>
    %9 = arith.subf %8, %3 : vector<16x128xf32>
    %10 = math.log1p %9 : vector<16x128xf32>
    %cst_5 = arith.constant -1.000000e+02 : f32
    %11 = vector.broadcast %cst_5 : f32 to vector<16x128xf32>
    %12 = arith.maximumf %10, %11 : vector<16x128xf32>
    %13 = arith.mulf %4, %7 : vector<16x128xf32>
    %cst_6 = arith.constant 1.000000e+00 : f32
    %14 = vector.broadcast %cst_6 : f32 to vector<16x128xf32>
    %15 = arith.subf %14, %4 : vector<16x128xf32>
    %16 = arith.mulf %15, %12 : vector<16x128xf32>
    %17 = arith.addf %13, %16 : vector<16x128xf32>
    %cst_7 = arith.constant 0.000000e+00 : f32
    %18 = vector.broadcast %cst_7 : f32 to vector<16x128xf32>
    %19 = arith.subf %18, %17 : vector<16x128xf32>
    %cst_8 = arith.constant 0.000000e+00 : f32
    %20 = vector.broadcast %cst_8 : f32 to vector<16x128xf32>
    %21 = arith.subf %20, %19 : vector<16x128xf32>
    %22 = math.exp %21 : vector<16x128xf32>
    %cst_9 = arith.constant 1.000000e+00 : f32
    %23 = vector.broadcast %cst_9 : f32 to vector<16x128xf32>
    %24 = arith.subf %23, %22 : vector<16x128xf32>
    %25 = arith.mulf %24, %24 : vector<16x128xf32>
    %cst_10 = arith.constant 1.000000e+00 : f32
    %26 = vector.broadcast %cst_10 : f32 to vector<16x128xf32>
    %27 = arith.mulf %26, %25 : vector<16x128xf32>
    %28 = arith.mulf %27, %19 : vector<16x128xf32>
    %c0_11 = arith.constant 0 : index
    %c0_12 = arith.constant 0 : index
    %29 = vector.load %arg5[%c0_11, %c0_12] : memref<16x128xf32, #tpu.memory_space<vmem>>, vector<16x128xf32>
    %30 = arith.addf %29, %28 : vector<16x128xf32>
    %c0_13 = arith.constant 0 : index
    %c0_14 = arith.constant 0 : index
    %31 = vector.load %arg5[%c0_13, %c0_14] : memref<16x128xf32, #tpu.memory_space<vmem>>, vector<16x128xf32>
    tpu.vector_store %arg5[%c0_13, %c0_14], %30 {strides = array<i32>} : memref<16x128xf32, #tpu.memory_space<vmem>>, vector<16x128xf32>,
    %c0_i32_15 = arith.constant 0 : i32
    %32 = arith.cmpi eq, %arg1, %c0_i32_15 : i32
    %33 = arith.extui %32 : i1 to i32
    %c0_i32_16 = arith.constant 0 : i32
    %34 = arith.cmpi ne, %33, %c0_i32_16 : i32
    scf.if %34 {
      %c0_17 = arith.constant 0 : index
      %c0_18 = arith.constant 0 : index
      %35 = vector.load %arg5[%c0_17, %c0_18] : memref<16x128xf32, #tpu.memory_space<vmem>>, vector<16x128xf32>
      %36 = vector.shape_cast %35 : vector<16x128xf32> to vector<2x8x128xf32>
      %cst_19 = arith.constant dense<0.000000e+00> : vector<8x128xf32>
      %37 = vector.multi_reduction <add>, %36, %cst_19 [0] : vector<2x8x128xf32> to vector<8x128xf32>
      %c0_20 = arith.constant 0 : index
      %c0_21 = arith.constant 0 : index
      %38 = vector.load %arg4[%c0_20, %c0_21] : memref<8x128xf32, #tpu.memory_space<vmem>>, vector<8x128xf32>
      tpu.vector_store %arg4[%c0_20, %c0_21], %37 {strides = array<i32>} : memref<8x128xf32, #tpu.memory_space<vmem>>, vector<8x128xf32>,
    } else {
    }
    return
  }
  func.func @transform_0(%arg0: i32, %arg1: i32) -> (i32, i32) {
    %c1_i32 = arith.constant 1 : i32
    %0 = arith.muli %arg0, %c1_i32 : i32
    %1 = arith.addi %0, %arg1 : i32
    %c0_i32 = arith.constant 0 : i32
    %c0_i32_0 = arith.constant 0 : i32
    return %1, %c0_i32 : i32, i32
  }
  func.func @transform_1(%arg0: i32, %arg1: i32) -> (i32, i32) {
    %c1_i32 = arith.constant 1 : i32
    %0 = arith.muli %arg0, %c1_i32 : i32
    %1 = arith.addi %0, %arg1 : i32
    %c0_i32 = arith.constant 0 : i32
    %c0_i32_0 = arith.constant 0 : i32
    return %1, %c0_i32 : i32, i32
  }
  func.func @transform_2(%arg0: i32, %arg1: i32) -> (i32, i32) {
    %c0_i32 = arith.constant 0 : i32
    %c0_i32_0 = arith.constant 0 : i32
    return %arg0, %c0_i32 : i32, i32
  }
}

</mosaic_0001>

<bundles_post_ra>
// kernel: tpu_custom_call.1
= control target key start
LH: loop header
LB: loop body
LE: loop exit
PB: predicated region body
PF: predicated region fallthrough
CT: control target
= control target key end

     0   :  { %7 = vsyncpa [#allocation4], 0  ;;  %s286_s0 = inlined_call_operand.hbm [shape: f32[16,128], index: 0, kind: input, shape index: {}]   ;;  %s287_s1 = inlined_call_operand.hbm [shape: f32[16,128], index: 1, kind: input, shape index: {}]   ;;  %s288_s2 = inlined_call_operand.hbm [shape: f32[8,128], index: 2, kind: output, shape index: {}]  }
   0x1   :  { %8 = vsyncpa [#allocation7], 0 }
   0x2   :  { %9 = vsyncpa [#allocation5], 0  ;;  %s230_s9 = smov [#allocation3]   ;;  %s158_s13 = scalar_lea.hbm %s286_s0, 256 }
   0x3   :  { %s19_s10 = sshll.u32 %s230_s9, 4  ;;  %p159_p0 = scmp.ne.s32.totalorder %s286_s0, %s158_s13  ;;  %s20_s10 = int_to_ptr.vmem [resolvable:$true] %s19_s10 }
   0x4   :  { %p162_p1 = scmp.lt.u32.totalorder %s158_s13, %s286_s0 }
   0x6   :  { %p164_p2 = pnand %p162_p1, %p159_p0 }
   0x8   :  { %167 = shalt.err (!%p164_p2)
}
   0x9   :  { %s168_s18 = scalar_lea.vmem %s20_s10, 256  ;;  %p173_p4 = scmp.lt.s32.totalorder %s20_s10, %s20_s10 }
   0xa   :  { %p169_p3 = scmp.ne.s32.totalorder %s20_s10, %s168_s18  ;;  %p174_p5 = scmp.lt.s32.totalorder %s168_s18, %s168_s18 }
   0xc   :  { %p175_p6 = por %p174_p5, %p173_p4 }
   0xe   :  { %p176_p7 = pnand %p175_p6, %p169_p3 }
  0x10   :  { %179 = shalt.err (!%p176_p7)
}
  0x11   :  { %s231_s19 = smov 128   ;;  %s232_s20 = smov 8  }
  0x12   :  { %25 = dma.hbm_to_vmem [thread:$0]  %s286_s0, 256, %s20_s10, [#allocation4], %s231_s19, %s231_s19, %s232_s20  }
  0x13   :  { %s233_s23 = smov [#allocation6]   ;;  %s180_s27 = scalar_lea.hbm %s287_s1, 256 }
  0x14   :  { %s35_s24 = sshll.u32 %s233_s23, 4  ;;  %p181_p8 = scmp.ne.s32.totalorder %s287_s1, %s180_s27  ;;  %s36_s24 = int_to_ptr.vmem [resolvable:$true] %s35_s24 }
  0x15   :  { %p184_p9 = scmp.lt.u32.totalorder %s180_s27, %s287_s1 }
  0x17   :  { %p186_p10 = pnand %p184_p9, %p181_p8 }
  0x19   :  { %189 = shalt.err (!%p186_p10)
}
  0x1a   :  { %s190_s4 = scalar_lea.vmem %s36_s24, 256  ;;  %p195_p12 = scmp.lt.s32.totalorder %s36_s24, %s36_s24 }
  0x1b   :  { %p191_p11 = scmp.ne.s32.totalorder %s36_s24, %s190_s4  ;;  %p196_p13 = scmp.lt.s32.totalorder %s190_s4, %s190_s4 }
  0x1d   :  { %p197_p0 = por %p196_p13, %p195_p12 }
  0x1f   :  { %p198_p1 = pnand %p197_p0, %p191_p11 }
  0x21   :  { %201 = shalt.err (!%p198_p1)
}
  0x22   :  { %41 = dma.hbm_to_vmem [thread:$0]  %s287_s1, 256, %s36_s24, [#allocation7], %s231_s19, %s231_s19, %s232_s20  }
  0x23   :  { %224 = dma.done.wait [#allocation4], 256  }
  0x24   :  { %225 = vsyncadd [#allocation4], 4294967040 }
  0x25   :  { %226 = dma.done.wait [#allocation7], 256  }
  0x26   :  { %227 = vsyncadd [#allocation7], 4294967040  ;;  %v58_v0 = vld [vmem:[#allocation3] sm:$0xff]  ;;  %v59_v1 = vld [vmem:[#allocation3 + $0x8] sm:$0xff]  ;;  %s234_s1 = smov [#allocation8]  }
  0x27   :  { %146 = vlog2.f32 %v58_v0  ;;  %v68_v2 = vsub.f32 0.0, %v58_v0  ;;  %v69_v3 = vsub.f32 0.0, %v59_v1  ;;  %v60_v16 = vld [vmem:[#allocation6] sm:$0xff]  ;;  %v61_v19 = vld [vmem:[#allocation6 + $0x8] sm:$0xff]  ;;  %s131_s6 = sshll.u32 %s234_s1, 4  ;;  %s132_s6 = int_to_ptr.vmem [resolvable:$true] %s131_s6 }
  0x28   :  { %148 = vlog2.f32 %v59_v1  ;;  %v92_v26 = vsub.f32 1.0, %v60_v16  ;;  %v93_v28 = vsub.f32 1.0, %v61_v19  ;;  %s202_s7 = scalar_lea.vmem %s132_s6, 128  ;;  %p207_p3 = scmp.lt.s32.totalorder %s132_s6, %s132_s6 }
  0x29   :  { %v70_v4 = vadd.f32 1.0, %v68_v2  ;;  %v79_v5 = vadd.f32 1.0, %v69_v3  ;;  %v73_v6 = vmul.f32 -0.5, %v68_v2  ;;  %v82_v7 = vmul.f32 -0.5, %v69_v3  ;;  %p203_p2 = scmp.ne.s32.totalorder %s132_s6, %s202_s7  ;;  %p208_p4 = scmp.lt.s32.totalorder %s202_s7, %s202_s7 }
  0x2a   :  { %v76_v10 = vand.u32 2147483647, %v68_v2  ;;  %v85_v14 = vand.u32 2147483647, %v69_v3 }
  0x2b   :  { %150 = vlog2.f32 %v70_v4  ;;  %v74_v8 = vadd.f32 1.0, %v73_v6  ;;  %v83_v11 = vadd.f32 1.0, %v82_v7  ;;  %p209_p5 = por %p208_p4, %p207_p3 }
  0x2c   :  { %152 = vlog2.f32 %v79_v5  ;;  %vm77_vm0 = vcmp.lt.f32.partialorder %v76_v10, 0.0004427343  ;;  %vm86_vm1 = vcmp.lt.f32.partialorder %v85_v14, 0.0004427343 }
  0x2d   :  { %v75_v17 = vmul.f32 %v74_v8, %v68_v2  ;;  %v84_v21 = vmul.f32 %v83_v11, %v69_v3  ;;  %p210_p6 = pnand %p209_p5, %p203_p2 }
  0x31   :  { %v147_v9 = vpop.eup %146 }
  0x32   :  { %v149_v12 = vpop.eup %148  ;;  %v63_v13 = vmul.f32 0.6931472, %v147_v9 }
  0x33   :  { %v65_v15 = vmul.f32 0.6931472, %v149_v12 }
  0x34   :  { %v66_v20 = vmax.f32 %v63_v13, -100.0 }
  0x35   :  { %v151_v18 = vpop.eup %150  ;;  %v67_v23 = vmax.f32 %v65_v15, -100.0 }
  0x36   :  { %v153_v22 = vpop.eup %152  ;;  %v72_v24 = vmul.f32 0.6931472, %v151_v18  ;;  %v90_v31 = vmul.f32 %v66_v20, %v60_v16 }
  0x37   :  { %v81_v25 = vmul.f32 0.6931472, %v153_v22  ;;  %v91_v33 = vmul.f32 %v67_v23, %v61_v19 }
  0x38   :  { %v78_v27 = vsel %vm77_vm0, %v75_v17, %v72_v24 }
  0x39   :  { %v87_v29 = vsel %vm86_vm1, %v84_v21, %v81_v25  ;;  %v88_v30 = vmax.f32 %v78_v27, -100.0 }
  0x3a   :  { %v89_v32 = vmax.f32 %v87_v29, -100.0 }
  0x3b   :  { %v94_v34 = vmul.f32 %v92_v26, %v88_v30 }
  0x3c   :  { %v95_v35 = vmul.f32 %v93_v28, %v89_v32 }
  0x3d   :  { %v96_v36 = vadd.f32 %v94_v34, %v90_v31 }
  0x3e   :  { %v97_v37 = vadd.f32 %v95_v35, %v91_v33 }
  0x3f   :  { %v98_v38 = vsub.f32 0.0, %v96_v36 }
  0x40   :  { %v99_v39 = vsub.f32 0.0, %v97_v37 }
  0x41   :  { %v100_v40 = vsub.f32 0.0, %v98_v38 }
  0x42   :  { %v101_v41 = vsub.f32 0.0, %v99_v39 }
  0x43   :  { %v102_v42 = vmul.f32 1.442695, %v100_v40 }
  0x44   :  { %v104_v43 = vmul.f32 1.442695, %v101_v41 }
  0x45   :  { %154 = vpow2.f32 %v102_v42 }
  0x46   :  { %156 = vpow2.f32 %v104_v43 }
  0x4f   :  { %v155_v44 = vpop.eup %154 }
  0x50   :  { %v157_v45 = vpop.eup %156  ;;  %v106_v46 = vsub.f32 1.0, %v155_v44 }
  0x51   :  { %v107_v47 = vsub.f32 1.0, %v157_v45 }
  0x52   :  { %v108_v48 = vmul.f32 %v106_v46, %v106_v46 }
  0x53   :  { %v109_v49 = vmul.f32 %v107_v47, %v107_v47 }
  0x54   :  { %v110_v50 = vmul.f32 %v108_v48, %v98_v38 }
  0x55   :  { %v111_v51 = vmul.f32 %v109_v49, %v99_v39 }
  0x57   :  { %v123_v52 = vadd.f32 %v111_v51, %v110_v50 }
  0x59   :  { %124 = vst [vmem:[#allocation8] sm:$0xff] %v123_v52 }
  0x5a   :  { %213 = shalt.err (!%p210_p6)
}
  0x5b   :  { %s214_s10 = scalar_lea.hbm %s288_s2, 128 }
  0x5c   :  { %p215_p7 = scmp.ne.s32.totalorder %s288_s2, %s214_s10  ;;  %p218_p8 = scmp.lt.u32.totalorder %s214_s10, %s288_s2 }
  0x5e   :  { %p220_p9 = pnand %p218_p8, %p215_p7 }
  0x60   :  { %223 = shalt.err (!%p220_p9)
}
  0x61   :  { %134 = dma.vmem_to_hbm [thread:$0]  %s132_s6, 128, %s288_s2, [#allocation5]  }
  0x62   :  { %228 = dma.done.wait [#allocation5], 128  }
  0x63   :  { %229 = vsyncadd [#allocation5], 4294967168 }
  0x64   :  { %138 = vsyncpa [#allocation4], 1 }
  0x65   :  { %139 = vsyncpa [#allocation7], 1 }
  0x66   :  { %140 = vsyncpa [#allocation5], 1 }

</bundles_post_ra>
